<compile_context>
chip_gen: v7x
topology: tpu7x:2x2x1
jax: 0.10.0
libtpu: 0.0.40
codegen_flags: <defaults>
</compile_context>

<pallas_src>
import jax
import jax.numpy as jnp
from jax.experimental import pallas as pl
from jax.experimental.pallas import tpu as pltpu


def _temperature_mlp_kernel(w1_ref, b1_ref, w2_ref, b2_ref, x_ref, o_ref):
    """One (T, L) batch tile: y = W2 @ relu(W1 * x + b1) + b2, H unrolled.

    Batch elements live on the lane/sublane axes, so every VPU op is full
    width.  w1/b1/w2/b2 are tiny SMEM-resident vectors read as scalar splats;
    layer 2's reduction is a running scalar-weighted accumulate (no XLU work).
    """
    x = x_ref[...]                                        # (T, L) f32, batch on lanes
    # j = 0 seeds the accumulator with b2 folded in (saves zeros init + final add).
    acc = jnp.maximum(x * w1_ref[0] + b1_ref[0], 0.0) * w2_ref[0] + b2_ref[0]
    for j in range(1, w1_ref.shape[0]):                   # static unroll, H = 10
        acc = acc + jnp.maximum(x * w1_ref[j] + b1_ref[j], 0.0) * w2_ref[j]
    o_ref[...] = acc.astype(o_ref.dtype)


def temperature_model_forward(x, w1, b1, w2, b2, *, lane_width=128, block_rows=4096):
    """Pallas forward pass matching TemperatureModel.forward.

    x : (B, 1) float32
    w1: (10, 1) float32   (nn.Linear(1, 10).weight layout)
    b1: (10,)   float32
    w2: (1, 10) float32   (nn.Linear(10, 1).weight layout)
    b2: (1,)    float32
    Returns (B, 1) float32.
    """
    B = x.shape[0]
    H = w1.shape[0]
    L = int(lane_width)
    assert L % 128 == 0, "lane_width must be a multiple of 128"

    # ---- layout glue: (B, 1) -> lane-dense (rows, L) slab (zero-copy when B % L == 0) ----
    x_flat = x.reshape(-1).astype(jnp.float32)
    pad = (-B) % L
    if pad:
        x_flat = jnp.pad(x_flat, (0, pad))                # tiny tail only; skipped if B % L == 0
    rows = (B + pad) // L
    x_slab = x_flat.reshape(rows, L)

    # ---- block-rows choice: partial last block allowed, >= ~8 blocks when possible ----
    if rows <= 8:
        T = rows                                          # block == full first dim
    else:
        t = min(int(block_rows), ((pl.cdiv(rows, 8) + 7) // 8) * 8)
        T = max(8, (t // 8) * 8)                          # multiple of 8 (sublane tile)
    num_blocks = pl.cdiv(rows, T)                         # Pallas masks the partial last block

    w1_vec = w1.reshape(H).astype(jnp.float32)
    b1_vec = b1.reshape(H).astype(jnp.float32)
    w2_vec = w2.reshape(H).astype(jnp.float32)
    b2_vec = b2.reshape(1).astype(jnp.float32)

    n_elems = rows * L
    cost = pl.CostEstimate(
        flops=5 * H * n_elems,                            # mul+add+max+mul+add per hidden unit
        bytes_accessed=8 * n_elems + 4 * (3 * H + 1),     # stream in + out, tiny params
        transcendentals=0,
    )

    smem = pl.BlockSpec(memory_space=pltpu.MemorySpace.SMEM)
    out_slab = pl.pallas_call(
        _temperature_mlp_kernel,
        out_shape=jax.ShapeDtypeStruct((rows, L), jnp.float32),
        grid=(num_blocks,),
        in_specs=[smem, smem, smem, smem,                 # tiny resident params
                  pl.BlockSpec((T, L), lambda i: (i, 0))],  # streamed batch tile
        out_specs=pl.BlockSpec((T, L), lambda i: (i, 0)),
        compiler_params=pltpu.CompilerParams(
            dimension_semantics=("parallel",)),
        cost_estimate=cost,
    )(w1_vec, b1_vec, w2_vec, b2_vec, x_slab)

    # Restore the PyTorch (B, 1) shape; slice only if we padded.
    out_flat = out_slab.reshape(-1)
    if pad:
        out_flat = out_flat[:B]
    return out_flat.reshape(B, 1)


def _ref_forward(x, w1, b1, w2, b2):
    """Pure-JAX reference identical to the PyTorch forward."""
    h = jnp.maximum(x @ w1.T + b1, 0.0)
    return h @ w2.T + b2


if __name__ == "__main__":
    key = jax.random.PRNGKey(0)
    k_x, k_w1, k_b1, k_w2, k_b2 = jax.random.split(key, 5)

    B, H = 8, 10
    # Deterministic synthetic parameters (PyTorch-Linear-style uniform init bounds).
    x = jax.random.uniform(k_x, (B, 1), jnp.float32, minval=-30.0, maxval=40.0)
    w1 = jax.random.uniform(k_w1, (H, 1), jnp.float32, minval=-1.0, maxval=1.0)
    b1 = jax.random.uniform(k_b1, (H,), jnp.float32, minval=-1.0, maxval=1.0)
    lim2 = 1.0 / jnp.sqrt(jnp.float32(H))
    w2 = jax.random.uniform(k_w2, (1, H), jnp.float32, minval=-lim2, maxval=lim2)
    b2 = jax.random.uniform(k_b2, (1,), jnp.float32, minval=-lim2, maxval=lim2)

    out = temperature_model_forward(x, w1, b1, w2, b2)
    out = jax.block_until_ready(out)

    ref = _ref_forward(x, w1, b1, w2, b2)
    assert out.shape == (B, 1)
    assert jnp.allclose(out, ref, atol=1e-5, rtol=1e-5), (out, ref)
    print("KERNEL_OK")
</pallas_src>

<mosaic_0001>
module attributes {stable_mosaic.version = 11 : i64} {
  func.func @_temperature_mlp_kernel(%arg0: i32, %arg1: memref<10xf32, #tpu.memory_space<smem>>, %arg2: memref<10xf32, #tpu.memory_space<smem>>, %arg3: memref<10xf32, #tpu.memory_space<smem>>, %arg4: memref<1xf32, #tpu.memory_space<smem>>, %arg5: memref<1x128xf32, #tpu.memory_space<vmem>>, %arg6: memref<1x128xf32, #tpu.memory_space<vmem>>) attributes {dimension_semantics = [#tpu.dimension_semantics<parallel>], iteration_bounds = array<i64: 1>, scalar_prefetch = 0 : i64, scratch_operands = 0 : i64, tpu.core_type = #tpu.core_type<tc>, window_params = [{transform_indices = @transform_0, window_bounds = array<i64: 10>}, {transform_indices = @transform_1, window_bounds = array<i64: 10>}, {transform_indices = @transform_2, window_bounds = array<i64: 10>}, {transform_indices = @transform_3, window_bounds = array<i64: 1>}, {transform_indices = @transform_4, window_bounds = array<i64: 1, 128>}, {transform_indices = @transform_5, window_bounds = array<i64: 1, 128>}]} {
    %c0 = arith.constant 0 : index
    %c0_0 = arith.constant 0 : index
    %0 = vector.load %arg5[%c0, %c0_0] : memref<1x128xf32, #tpu.memory_space<vmem>>, vector<1x128xf32>
    %c0_1 = arith.constant 0 : index
    %1 = memref.load %arg1[%c0_1] : memref<10xf32, #tpu.memory_space<smem>>
    %2 = vector.broadcast %1 : f32 to vector<1x128xf32>
    %3 = arith.mulf %0, %2 : vector<1x128xf32>
    %c0_2 = arith.constant 0 : index
    %4 = memref.load %arg2[%c0_2] : memref<10xf32, #tpu.memory_space<smem>>
    %5 = vector.broadcast %4 : f32 to vector<1x128xf32>
    %6 = arith.addf %3, %5 : vector<1x128xf32>
    %cst = arith.constant 0.000000e+00 : f32
    %7 = vector.broadcast %cst : f32 to vector<1x128xf32>
    %8 = arith.maximumf %6, %7 : vector<1x128xf32>
    %c0_3 = arith.constant 0 : index
    %9 = memref.load %arg3[%c0_3] : memref<10xf32, #tpu.memory_space<smem>>
    %10 = vector.broadcast %9 : f32 to vector<1x128xf32>
    %11 = arith.mulf %8, %10 : vector<1x128xf32>
    %c0_4 = arith.constant 0 : index
    %12 = memref.load %arg4[%c0_4] : memref<1xf32, #tpu.memory_space<smem>>
    %13 = vector.broadcast %12 : f32 to vector<1x128xf32>
    %14 = arith.addf %11, %13 : vector<1x128xf32>
    %c1 = arith.constant 1 : index
    %15 = memref.load %arg1[%c1] : memref<10xf32, #tpu.memory_space<smem>>
    %16 = vector.broadcast %15 : f32 to vector<1x128xf32>
    %17 = arith.mulf %0, %16 : vector<1x128xf32>
    %c1_5 = arith.constant 1 : index
    %18 = memref.load %arg2[%c1_5] : memref<10xf32, #tpu.memory_space<smem>>
    %19 = vector.broadcast %18 : f32 to vector<1x128xf32>
    %20 = arith.addf %17, %19 : vector<1x128xf32>
    %cst_6 = arith.constant 0.000000e+00 : f32
    %21 = vector.broadcast %cst_6 : f32 to vector<1x128xf32>
    %22 = arith.maximumf %20, %21 : vector<1x128xf32>
    %c1_7 = arith.constant 1 : index
    %23 = memref.load %arg3[%c1_7] : memref<10xf32, #tpu.memory_space<smem>>
    %24 = vector.broadcast %23 : f32 to vector<1x128xf32>
    %25 = arith.mulf %22, %24 : vector<1x128xf32>
    %26 = arith.addf %14, %25 : vector<1x128xf32>
    %c2 = arith.constant 2 : index
    %27 = memref.load %arg1[%c2] : memref<10xf32, #tpu.memory_space<smem>>
    %28 = vector.broadcast %27 : f32 to vector<1x128xf32>
    %29 = arith.mulf %0, %28 : vector<1x128xf32>
    %c2_8 = arith.constant 2 : index
    %30 = memref.load %arg2[%c2_8] : memref<10xf32, #tpu.memory_space<smem>>
    %31 = vector.broadcast %30 : f32 to vector<1x128xf32>
    %32 = arith.addf %29, %31 : vector<1x128xf32>
    %cst_9 = arith.constant 0.000000e+00 : f32
    %33 = vector.broadcast %cst_9 : f32 to vector<1x128xf32>
    %34 = arith.maximumf %32, %33 : vector<1x128xf32>
    %c2_10 = arith.constant 2 : index
    %35 = memref.load %arg3[%c2_10] : memref<10xf32, #tpu.memory_space<smem>>
    %36 = vector.broadcast %35 : f32 to vector<1x128xf32>
    %37 = arith.mulf %34, %36 : vector<1x128xf32>
    %38 = arith.addf %26, %37 : vector<1x128xf32>
    %c3 = arith.constant 3 : index
    %39 = memref.load %arg1[%c3] : memref<10xf32, #tpu.memory_space<smem>>
    %40 = vector.broadcast %39 : f32 to vector<1x128xf32>
    %41 = arith.mulf %0, %40 : vector<1x128xf32>
    %c3_11 = arith.constant 3 : index
    %42 = memref.load %arg2[%c3_11] : memref<10xf32, #tpu.memory_space<smem>>
    %43 = vector.broadcast %42 : f32 to vector<1x128xf32>
    %44 = arith.addf %41, %43 : vector<1x128xf32>
    %cst_12 = arith.constant 0.000000e+00 : f32
    %45 = vector.broadcast %cst_12 : f32 to vector<1x128xf32>
    %46 = arith.maximumf %44, %45 : vector<1x128xf32>
    %c3_13 = arith.constant 3 : index
    %47 = memref.load %arg3[%c3_13] : memref<10xf32, #tpu.memory_space<smem>>
    %48 = vector.broadcast %47 : f32 to vector<1x128xf32>
    %49 = arith.mulf %46, %48 : vector<1x128xf32>
    %50 = arith.addf %38, %49 : vector<1x128xf32>
    %c4 = arith.constant 4 : index
    %51 = memref.load %arg1[%c4] : memref<10xf32, #tpu.memory_space<smem>>
    %52 = vector.broadcast %51 : f32 to vector<1x128xf32>
    %53 = arith.mulf %0, %52 : vector<1x128xf32>
    %c4_14 = arith.constant 4 : index
    %54 = memref.load %arg2[%c4_14] : memref<10xf32, #tpu.memory_space<smem>>
    %55 = vector.broadcast %54 : f32 to vector<1x128xf32>
    %56 = arith.addf %53, %55 : vector<1x128xf32>
    %cst_15 = arith.constant 0.000000e+00 : f32
    %57 = vector.broadcast %cst_15 : f32 to vector<1x128xf32>
    %58 = arith.maximumf %56, %57 : vector<1x128xf32>
    %c4_16 = arith.constant 4 : index
    %59 = memref.load %arg3[%c4_16] : memref<10xf32, #tpu.memory_space<smem>>
    %60 = vector.broadcast %59 : f32 to vector<1x128xf32>
    %61 = arith.mulf %58, %60 : vector<1x128xf32>
    %62 = arith.addf %50, %61 : vector<1x128xf32>
    %c5 = arith.constant 5 : index
    %63 = memref.load %arg1[%c5] : memref<10xf32, #tpu.memory_space<smem>>
    %64 = vector.broadcast %63 : f32 to vector<1x128xf32>
    %65 = arith.mulf %0, %64 : vector<1x128xf32>
    %c5_17 = arith.constant 5 : index
    %66 = memref.load %arg2[%c5_17] : memref<10xf32, #tpu.memory_space<smem>>
    %67 = vector.broadcast %66 : f32 to vector<1x128xf32>
    %68 = arith.addf %65, %67 : vector<1x128xf32>
    %cst_18 = arith.constant 0.000000e+00 : f32
    %69 = vector.broadcast %cst_18 : f32 to vector<1x128xf32>
    %70 = arith.maximumf %68, %69 : vector<1x128xf32>
    %c5_19 = arith.constant 5 : index
    %71 = memref.load %arg3[%c5_19] : memref<10xf32, #tpu.memory_space<smem>>
    %72 = vector.broadcast %71 : f32 to vector<1x128xf32>
    %73 = arith.mulf %70, %72 : vector<1x128xf32>
    %74 = arith.addf %62, %73 : vector<1x128xf32>
    %c6 = arith.constant 6 : index
    %75 = memref.load %arg1[%c6] : memref<10xf32, #tpu.memory_space<smem>>
    %76 = vector.broadcast %75 : f32 to vector<1x128xf32>
    %77 = arith.mulf %0, %76 : vector<1x128xf32>
    %c6_20 = arith.constant 6 : index
    %78 = memref.load %arg2[%c6_20] : memref<10xf32, #tpu.memory_space<smem>>
    %79 = vector.broadcast %78 : f32 to vector<1x128xf32>
    %80 = arith.addf %77, %79 : vector<1x128xf32>
    %cst_21 = arith.constant 0.000000e+00 : f32
    %81 = vector.broadcast %cst_21 : f32 to vector<1x128xf32>
    %82 = arith.maximumf %80, %81 : vector<1x128xf32>
    %c6_22 = arith.constant 6 : index
    %83 = memref.load %arg3[%c6_22] : memref<10xf32, #tpu.memory_space<smem>>
    %84 = vector.broadcast %83 : f32 to vector<1x128xf32>
    %85 = arith.mulf %82, %84 : vector<1x128xf32>
    %86 = arith.addf %74, %85 : vector<1x128xf32>
    %c7 = arith.constant 7 : index
    %87 = memref.load %arg1[%c7] : memref<10xf32, #tpu.memory_space<smem>>
    %88 = vector.broadcast %87 : f32 to vector<1x128xf32>
    %89 = arith.mulf %0, %88 : vector<1x128xf32>
    %c7_23 = arith.constant 7 : index
    %90 = memref.load %arg2[%c7_23] : memref<10xf32, #tpu.memory_space<smem>>
    %91 = vector.broadcast %90 : f32 to vector<1x128xf32>
    %92 = arith.addf %89, %91 : vector<1x128xf32>
    %cst_24 = arith.constant 0.000000e+00 : f32
    %93 = vector.broadcast %cst_24 : f32 to vector<1x128xf32>
    %94 = arith.maximumf %92, %93 : vector<1x128xf32>
    %c7_25 = arith.constant 7 : index
    %95 = memref.load %arg3[%c7_25] : memref<10xf32, #tpu.memory_space<smem>>
    %96 = vector.broadcast %95 : f32 to vector<1x128xf32>
    %97 = arith.mulf %94, %96 : vector<1x128xf32>
    %98 = arith.addf %86, %97 : vector<1x128xf32>
    %c8 = arith.constant 8 : index
    %99 = memref.load %arg1[%c8] : memref<10xf32, #tpu.memory_space<smem>>
    %100 = vector.broadcast %99 : f32 to vector<1x128xf32>
    %101 = arith.mulf %0, %100 : vector<1x128xf32>
    %c8_26 = arith.constant 8 : index
    %102 = memref.load %arg2[%c8_26] : memref<10xf32, #tpu.memory_space<smem>>
    %103 = vector.broadcast %102 : f32 to vector<1x128xf32>
    %104 = arith.addf %101, %103 : vector<1x128xf32>
    %cst_27 = arith.constant 0.000000e+00 : f32
    %105 = vector.broadcast %cst_27 : f32 to vector<1x128xf32>
    %106 = arith.maximumf %104, %105 : vector<1x128xf32>
    %c8_28 = arith.constant 8 : index
    %107 = memref.load %arg3[%c8_28] : memref<10xf32, #tpu.memory_space<smem>>
    %108 = vector.broadcast %107 : f32 to vector<1x128xf32>
    %109 = arith.mulf %106, %108 : vector<1x128xf32>
    %110 = arith.addf %98, %109 : vector<1x128xf32>
    %c9 = arith.constant 9 : index
    %111 = memref.load %arg1[%c9] : memref<10xf32, #tpu.memory_space<smem>>
    %112 = vector.broadcast %111 : f32 to vector<1x128xf32>
    %113 = arith.mulf %0, %112 : vector<1x128xf32>
    %c9_29 = arith.constant 9 : index
    %114 = memref.load %arg2[%c9_29] : memref<10xf32, #tpu.memory_space<smem>>
    %115 = vector.broadcast %114 : f32 to vector<1x128xf32>
    %116 = arith.addf %113, %115 : vector<1x128xf32>
    %cst_30 = arith.constant 0.000000e+00 : f32
    %117 = vector.broadcast %cst_30 : f32 to vector<1x128xf32>
    %118 = arith.maximumf %116, %117 : vector<1x128xf32>
    %c9_31 = arith.constant 9 : index
    %119 = memref.load %arg3[%c9_31] : memref<10xf32, #tpu.memory_space<smem>>
    %120 = vector.broadcast %119 : f32 to vector<1x128xf32>
    %121 = arith.mulf %118, %120 : vector<1x128xf32>
    %122 = arith.addf %110, %121 : vector<1x128xf32>
    %c0_32 = arith.constant 0 : index
    %c0_33 = arith.constant 0 : index
    %123 = vector.load %arg6[%c0_32, %c0_33] : memref<1x128xf32, #tpu.memory_space<vmem>>, vector<1x128xf32>
    tpu.vector_store %arg6[%c0_32, %c0_33], %122 {strides = array<i32>} : memref<1x128xf32, #tpu.memory_space<vmem>>, vector<1x128xf32>,
    return
  }
  func.func @transform_0(%arg0: i32) -> i32 {
    %c0_i32 = arith.constant 0 : i32
    %c0_i32_0 = arith.constant 0 : i32
    return %c0_i32 : i32
  }
  func.func @transform_1(%arg0: i32) -> i32 {
    %c0_i32 = arith.constant 0 : i32
    %c0_i32_0 = arith.constant 0 : i32
    return %c0_i32 : i32
  }
  func.func @transform_2(%arg0: i32) -> i32 {
    %c0_i32 = arith.constant 0 : i32
    %c0_i32_0 = arith.constant 0 : i32
    return %c0_i32 : i32
  }
  func.func @transform_3(%arg0: i32) -> i32 {
    %c0_i32 = arith.constant 0 : i32
    %c0_i32_0 = arith.constant 0 : i32
    return %c0_i32 : i32
  }
  func.func @transform_4(%arg0: i32) -> (i32, i32) {
    %c0_i32 = arith.constant 0 : i32
    %c0_i32_0 = arith.constant 0 : i32
    return %arg0, %c0_i32 : i32, i32
  }
  func.func @transform_5(%arg0: i32) -> (i32, i32) {
    %c0_i32 = arith.constant 0 : i32
    %c0_i32_0 = arith.constant 0 : i32
    return %arg0, %c0_i32 : i32, i32
  }
}

</mosaic_0001>

<bundles_post_ra>
// kernel: tpu_custom_call.1
= control target key start
LH: loop header
LB: loop body
LE: loop exit
PB: predicated region body
PF: predicated region fallthrough
CT: control target
= control target key end

     0   :  { %11 = vsyncpa [#allocation5], 0  ;;  %s428_s0 = inlined_call_operand.vmem [shape: f32[10], index: 0, kind: input, shape index: {}]   ;;  %s429_s1 = inlined_call_operand.vmem [shape: f32[10], index: 1, kind: input, shape index: {}]   ;;  %s430_s2 = inlined_call_operand.vmem [shape: f32[10], index: 2, kind: input, shape index: {}]   ;;  %s431_s3 = inlined_call_operand.<no memory space> [shape: f32[1], index: 3, kind: input, shape index: {}]   ;;  %s432_s4 = inlined_call_operand.vmem [shape: f32[1,128], index: 4, kind: input, shape index: {}]   ;;  %s433_s5 = inlined_call_operand.hbm [shape: f32[1,128], index: 5, kind: output, shape index: {}]  }
   0x1   :  { %12 = vsyncpa [#allocation7], 0  ;;  %s30_s20 = sshll.u32 %s429_s1, 4  ;;  %s31_s20 = int_to_ptr.vmem [resolvable:$true] %s30_s20 }
   0x2   :  { %13 = vsyncpa [#allocation4], 0  ;;  %s20_s23 = sshll.u32 %s428_s0, 4  ;;  %s219_s24 = scalar_lea.vmem %s31_s20, 16  ;;  %s21_s23 = int_to_ptr.vmem [resolvable:$true] %s20_s23 }
   0x3   :  { %p220_p0 = scmp.ne.s32.totalorder %s31_s20, %s219_s24  ;;  %p224_p1 = scmp.lt.s32.totalorder %s31_s20, %s31_s20 }
   0x4   :  { %p225_p2 = scmp.lt.s32.totalorder %s219_s24, %s219_s24 }
   0x6   :  { %p226_p3 = por %p225_p2, %p224_p1 }
   0x8   :  { %p227_p4 = pnand %p226_p3, %p220_p0 }
   0xa   :  { %230 = shalt.err (!%p227_p4)
}
   0xb   :  { %s283_s25 = smov [#allocation6]   ;;  %s231_s26 = scalar_lea.vmem %s21_s23, 16 }
   0xc   :  { %33 = dma.vmem_to_smem %s31_s20, 16, %s283_s25, [#allocation7]  }
   0xd   :  { %p232_p5 = scmp.ne.s32.totalorder %s21_s23, %s231_s26  ;;  %p236_p6 = scmp.lt.s32.totalorder %s21_s23, %s21_s23 }
   0xe   :  { %p237_p7 = scmp.lt.s32.totalorder %s231_s26, %s231_s26 }
  0x10   :  { %p238_p8 = por %p237_p7, %p236_p6 }
  0x12   :  { %p239_p9 = pnand %p238_p8, %p232_p5 }
  0x14   :  { %242 = shalt.err (!%p239_p9)
}
  0x15   :  { %s284_s1 = smov [#allocation3]   ;;  %s40_s28 = sshll.u32 %s430_s2, 4  ;;  %s41_s28 = int_to_ptr.vmem [resolvable:$true] %s40_s28 }
  0x16   :  { %23 = dma.vmem_to_smem %s21_s23, 16, %s284_s1, [#allocation5]  }
  0x17   :  { %s243_s29 = scalar_lea.vmem %s41_s28, 16  ;;  %p248_p11 = scmp.lt.s32.totalorder %s41_s28, %s41_s28 }
  0x18   :  { %p244_p10 = scmp.ne.s32.totalorder %s41_s28, %s243_s29  ;;  %p249_p12 = scmp.lt.s32.totalorder %s243_s29, %s243_s29 }
  0x1a   :  { %p250_p13 = por %p249_p12, %p248_p11 }
  0x1c   :  { %p251_p0 = pnand %p250_p13, %p244_p10 }
  0x1e   :  { %254 = shalt.err (!%p251_p0)
}
  0x1f   :  { %s285_s30 = smov [#allocation8]  }
  0x20   :  { %43 = dma.vmem_to_smem %s41_s28, 16, %s285_s30, [#allocation7]  }
  0x21   :  { %277 = dma.done.wait [#allocation5], 16  }
  0x22   :  { %278 = vsyncadd [#allocation5], 4294967280 }
  0x23   :  { %279 = dma.done.wait [#allocation7], 32  }
  0x24   :  { %280 = vsyncadd [#allocation7], 4294967264 }
  0x25   :  { %57 = sfence }
  0x26   :  { %s59_s6 = sld [smem:[#allocation3]]  ;;  %s188_s2 = sld [smem:[#allocation3 + $0x1]]  ;;  %v335_v0 = vld [vmem:[%s432_s4] sm:$0x1]  ;;  %v70_v5 = vstv %s431_s3 }
  0x27   :  { %s62_s7 = sld [smem:[#allocation6]]  ;;  %s189_s9 = sld [smem:[#allocation6 + $0x1]] }
  0x28   :  { %s326_s8 = sld [smem:[#allocation8]]  ;;  %s328_s10 = sld [smem:[#allocation8 + $0x1]] }
  0x29   :  { %s191_s11 = sld [smem:[#allocation3 + $0x2]]  ;;  %s194_s16 = sld [smem:[#allocation3 + $0x3]] }
  0x2a   :  { %s330_s12 = sld [smem:[#allocation6 + $0x2]]  ;;  %s339_s17 = sld [smem:[#allocation6 + $0x3]] }
  0x2b   :  { %s337_s15 = sld [smem:[#allocation8 + $0x2]]  ;;  %s341_s18 = sld [smem:[#allocation8 + $0x3]] }
  0x2c   :  { %v60_v1 = vstv %s59_s6  ;;  %s343_s19 = sld [smem:[#allocation3 + $0x4]]  ;;  %v73_v4 = vstv %s188_s2  ;;  %s348_s4 = sld [smem:[#allocation3 + $0x5]] }
  0x2d   :  { %v63_v2 = vstv %s62_s7  ;;  %s345_s20 = sld [smem:[#allocation6 + $0x4]]  ;;  %v61_v3 = vmul.f32 %v60_v1, %v335_v0  ;;  %v74_v6 = vmul.f32 %v73_v4, %v335_v0  ;;  %v76_v7 = vstv %s189_s9  ;;  %s356_s24 = sld [smem:[#allocation6 + $0x5]] }
  0x2e   :  { %s354_s23 = sld [smem:[#allocation8 + $0x4]]  ;;  %v67_v9 = vstv %s326_s8  ;;  %s360_s25 = sld [smem:[#allocation3 + $0x6]]  ;;  %v80_v13 = vstv %s328_s10 }
  0x2f   :  { %v64_v8 = vadd.f32 %v63_v2, %v61_v3  ;;  %v84_v10 = vstv %s191_s11  ;;  %s362_s26 = sld [smem:[#allocation6 + $0x6]]  ;;  %v77_v12 = vadd.f32 %v76_v7, %v74_v6  ;;  %v95_v15 = vstv %s194_s16  ;;  %s366_s3 = sld [smem:[#allocation8 + $0x5]] }
  0x30   :  { %v87_v11 = vstv %s330_s12  ;;  %v85_v14 = vmul.f32 %v84_v10, %v335_v0  ;;  %s368_s1 = sld [smem:[#allocation3 + $0x7]]  ;;  %v96_v18 = vmul.f32 %v95_v15, %v335_v0  ;;  %v98_v19 = vstv %s339_s17  ;;  %s373_s0 = sld [smem:[#allocation8 + $0x6]] }
  0x31   :  { %v65_v16 = vmax.f32 %v64_v8, 0.0  ;;  %v91_v17 = vstv %s337_s15  ;;  %s375_s27 = sld [smem:[#allocation6 + $0x7]]  ;;  %v78_v20 = vmax.f32 %v77_v12, 0.0  ;;  %s379_s28 = sld [smem:[#allocation3 + $0x8]]  ;;  %v102_v26 = vstv %s341_s18 }
  0x32   :  { %v88_v21 = vadd.f32 %v87_v11, %v85_v14  ;;  %v106_v22 = vstv %s343_s19  ;;  %s381_s29 = sld [smem:[#allocation6 + $0x8]]  ;;  %v99_v25 = vadd.f32 %v98_v19, %v96_v18  ;;  %s385_s30 = sld [smem:[#allocation8 + $0x7]]  ;;  %v117_v30 = vstv %s348_s4 }
  0x33   :  { %v109_v23 = vstv %s345_s20  ;;  %v68_v24 = vmul.f32 %v67_v9, %v65_v16  ;;  %v107_v27 = vmul.f32 %v106_v22, %v335_v0  ;;  %v81_v28 = vmul.f32 %v80_v13, %v78_v20  ;;  %s389_s6 = sld [smem:[#allocation3 + $0x9]]  ;;  %s397_s8 = sld [smem:[#allocation8 + $0x8]] }
  0x34   :  { %v89_v29 = vmax.f32 %v88_v21, 0.0  ;;  %v120_v31 = vstv %s356_s24  ;;  %s391_s7 = sld [smem:[#allocation6 + $0x9]]  ;;  %v100_v33 = vmax.f32 %v99_v25, 0.0  ;;  %v118_v35 = vmul.f32 %v117_v30, %v335_v0  ;;  %s286_s9 = smov [#allocation9]  }
  0x35   :  { %v71_v32 = vadd.f32 %v70_v5, %v68_v24  ;;  %v110_v34 = vadd.f32 %v109_v23, %v107_v27  ;;  %v113_v37 = vstv %s354_s23  ;;  %v128_v38 = vstv %s360_s25  ;;  %s403_s2 = sld [smem:[#allocation8 + $0x9]]  ;;  %s178_s10 = sshll.u32 %s286_s9, 4  ;;  %s179_s10 = int_to_ptr.vmem [resolvable:$true] %s178_s10 }
  0x36   :  { %v92_v36 = vmul.f32 %v91_v17, %v89_v29  ;;  %v131_v39 = vstv %s362_s26  ;;  %v103_v41 = vmul.f32 %v102_v26, %v100_v33  ;;  %v121_v43 = vadd.f32 %v120_v31, %v118_v35  ;;  %s255_s11 = scalar_lea.vmem %s179_s10, 16  ;;  %s259_s12 = scalar_lea.vmem %s179_s10, 32 }
  0x37   :  { %v82_v40 = vadd.f32 %v81_v28, %v71_v32  ;;  %v111_v42 = vmax.f32 %v110_v34, 0.0  ;;  %v124_v44 = vstv %s366_s3  ;;  %v129_v45 = vmul.f32 %v128_v38, %v335_v0  ;;  %p256_p1 = scmp.ne.s32.totalorder %s179_s10, %s255_s11  ;;  %p260_p2 = scmp.lt.s32.totalorder %s179_s10, %s179_s10 }
  0x38   :  { %v139_v46 = vstv %s368_s1  ;;  %v142_v47 = vstv %s375_s27  ;;  %v122_v50 = vmax.f32 %v121_v43, 0.0  ;;  %v135_v53 = vstv %s373_s0  ;;  %p261_p3 = scmp.lt.s32.totalorder %s259_s12, %s255_s11 }
  0x39   :  { %v93_v48 = vadd.f32 %v92_v36, %v82_v40  ;;  %v114_v49 = vmul.f32 %v113_v37, %v111_v42  ;;  %v140_v51 = vmul.f32 %v139_v46, %v335_v0  ;;  %v132_v52 = vadd.f32 %v131_v39, %v129_v45 }
  0x3a   :  { %v150_v54 = vstv %s379_s28  ;;  %v153_v55 = vstv %s381_s29  ;;  %v125_v57 = vmul.f32 %v124_v44, %v122_v50  ;;  %v146_v61 = vstv %s385_s30  ;;  %p262_p4 = por %p261_p3, %p260_p2 }
  0x3b   :  { %v104_v56 = vadd.f32 %v103_v41, %v93_v48  ;;  %v143_v58 = vadd.f32 %v142_v47, %v140_v51  ;;  %v151_v59 = vmul.f32 %v150_v54, %v335_v0  ;;  %v133_v60 = vmax.f32 %v132_v52, 0.0 }
  0x3c   :  { %v161_v62 = vstv %s389_s6  ;;  %v164_v63 = vstv %s391_s7  ;;  %v157_v6 = vstv %s397_s8  ;;  %v168_v11 = vstv %s403_s2  ;;  %p263_p5 = pnand %p262_p4, %p256_p1 }
  0x3d   :  { %v115_v1 = vadd.f32 %v114_v49, %v104_v56  ;;  %v144_v2 = vmax.f32 %v143_v58, 0.0  ;;  %v154_v3 = vadd.f32 %v153_v55, %v151_v59  ;;  %v162_v4 = vmul.f32 %v161_v62, %v335_v0 }
  0x3e   :  { %v136_v5 = vmul.f32 %v135_v53, %v133_v60 }
  0x3f   :  { %v126_v7 = vadd.f32 %v125_v57, %v115_v1  ;;  %v147_v8 = vmul.f32 %v146_v61, %v144_v2  ;;  %v155_v9 = vmax.f32 %v154_v3, 0.0  ;;  %v165_v10 = vadd.f32 %v164_v63, %v162_v4 }
  0x41   :  { %v137_v12 = vadd.f32 %v136_v5, %v126_v7  ;;  %v158_v13 = vmul.f32 %v157_v6, %v155_v9  ;;  %v166_v14 = vmax.f32 %v165_v10, 0.0 }
  0x43   :  { %v148_v15 = vadd.f32 %v147_v8, %v137_v12  ;;  %v169_v16 = vmul.f32 %v168_v11, %v166_v14 }
  0x45   :  { %v159_v17 = vadd.f32 %v158_v13, %v148_v15 }
  0x47   :  { %v170_v18 = vadd.f32 %v169_v16, %v159_v17 }
  0x49   :  { %171 = vst [vmem:[#allocation9] sm:$0x1] %v170_v18 }
  0x4a   :  { %266 = shalt.err (!%p263_p5)
}
  0x4b   :  { %s267_s15 = scalar_lea.hbm %s433_s5, 16 }
  0x4c   :  { %p268_p6 = scmp.ne.s32.totalorder %s433_s5, %s267_s15  ;;  %p271_p7 = scmp.lt.u32.totalorder %s267_s15, %s433_s5 }
  0x4e   :  { %p273_p8 = pnand %p271_p7, %p268_p6 }
  0x50   :  { %276 = shalt.err (!%p273_p8)
}
  0x51   :  { %181 = dma.vmem_to_hbm [thread:$0]  %s179_s10, 16, %s433_s5, [#allocation4]  }
  0x52   :  { %281 = dma.done.wait [#allocation4], 16  }
  0x53   :  { %282 = vsyncadd [#allocation4], 4294967280 }
  0x54   :  { %185 = vsyncpa [#allocation4], 1 }
  0x55   :  { %186 = vsyncpa [#allocation5], 1 }
  0x56   :  { %187 = vsyncpa [#allocation7], 1 }

</bundles_post_ra>
